<compile_context>
chip_gen: v6e
topology: v6e:2x2x1
jax: 0.10.0
libtpu: 0.0.40
codegen_flags: <defaults>
</compile_context>

<pallas_src>
import math

import jax
import jax.numpy as jnp
from jax.experimental import pallas as pl
from jax.experimental.pallas import tpu as pltpu

_GELU_C = math.sqrt(2.0 / math.pi)


def _round_up(v, m):
    return (v + m - 1) // m * m


def _gelu_tanh_f32(h):
    c = jnp.float32(_GELU_C)
    return 0.5 * h * (1.0 + jnp.tanh(c * (h + 0.044715 * (h * h * h))))


def _pick_chunk(tm_rows):
    """Largest multiple-of-8 divisor of tm_rows that is <= max(64, tm_rows // 4)."""
    target = max(64, tm_rows // 4)
    best = 8
    for c in range(8, tm_rows + 1, 8):
        if tm_rows % c == 0 and c <= target:
            best = c
    return best


def _vmem_capacity_bytes():
    try:
        return int(pltpu.get_tpu_info().vmem_capacity_bytes)
    except Exception:
        return 64 << 20  # conservative: v7x per-TensorCore VMEM


# --------------------------------------------------------------------------- #
# Kernels
# --------------------------------------------------------------------------- #
def _make_resident_kernel(tm_rows, chunk):
    """Weights resident in VMEM; grid only over token tiles."""
    n_chunks = tm_rows // chunk

    def kernel(x_ref, w1_ref, b1_ref, w2_ref, b2_ref, o_ref):
        w1 = w1_ref[...]          # (Ep, Hp) bf16, single-buffered resident
        w2 = w2_ref[...]          # (Hp, Ep) bf16
        b1 = b1_ref[...]          # (1, Hp) f32
        b2 = b2_ref[...]          # (1, Ep) f32
        # Fully-unrolled row chunks: GELU of chunk k+1 overlaps matmul2 of chunk k.
        for ci in range(n_chunks):
            r = ci * chunk
            xc = x_ref[pl.ds(r, chunk), :]                       # bf16
            h = jnp.dot(xc, w1, preferred_element_type=jnp.float32) + b1
            g = _gelu_tanh_f32(h).astype(jnp.bfloat16)
            y = jnp.dot(g, w2, preferred_element_type=jnp.float32) + b2
            o_ref[pl.ds(r, chunk), :] = y.astype(o_ref.dtype)

    return kernel


def _make_htiled_kernel(tm_rows, chunk):
    """Hidden dim tiled (grid axis 1, 'arbitrary'); accumulate matmul2 in VMEM."""
    n_chunks = tm_rows // chunk

    def kernel(x_ref, w1_ref, b1_ref, w2_ref, b2_ref, o_ref, acc_ref):
        h_idx = pl.program_id(1)

        @pl.when(h_idx == 0)
        def _():
            acc_ref[...] = jnp.broadcast_to(b2_ref[...], acc_ref.shape)

        w1 = w1_ref[...]          # (Ep, TH) bf16
        w2 = w2_ref[...]          # (TH, Ep) bf16
        b1 = b1_ref[...]          # (1, TH) f32
        for ci in range(n_chunks):
            r = ci * chunk
            xc = x_ref[pl.ds(r, chunk), :]
            h = jnp.dot(xc, w1, preferred_element_type=jnp.float32) + b1
            g = _gelu_tanh_f32(h).astype(jnp.bfloat16)
            acc_ref[pl.ds(r, chunk), :] += jnp.dot(
                g, w2, preferred_element_type=jnp.float32)

        @pl.when(h_idx == pl.num_programs(1) - 1)
        def _():
            o_ref[...] = acc_ref[...].astype(o_ref.dtype)

    return kernel


# --------------------------------------------------------------------------- #
# Host-side wrappers
# --------------------------------------------------------------------------- #
def prepare_ffn_params(w1, b1, w2, b2):
    """Pad to lane multiples and cast weights to bf16 ONCE (hoisted out of the
    per-forward path). w1:(E,4E) b1:(4E,) w2:(4E,E) b2:(E,)."""
    E, H = w1.shape
    Ep = _round_up(E, 128)
    Hp = _round_up(H, 128)
    if Ep == E and Hp == H:            # fast path: already lane-aligned
        w1_p = w1.astype(jnp.bfloat16)
        w2_p = w2.astype(jnp.bfloat16)
        b1_p = b1.astype(jnp.float32).reshape(1, H)
        b2_p = b2.astype(jnp.float32).reshape(1, E)
    else:
        w1_p = jnp.zeros((Ep, Hp), jnp.bfloat16).at[:E, :H].set(w1.astype(jnp.bfloat16))
        w2_p = jnp.zeros((Hp, Ep), jnp.bfloat16).at[:H, :E].set(w2.astype(jnp.bfloat16))
        b1_p = jnp.zeros((1, Hp), jnp.float32).at[0, :H].set(b1.astype(jnp.float32))
        b2_p = jnp.zeros((1, Ep), jnp.float32).at[0, :E].set(b2.astype(jnp.float32))
    return {"w1": w1_p, "b1": b1_p, "w2": w2_p, "b2": b2_p, "E": E, "H": H}


def feed_forward(x, params, *, tm=None, force_h_tiling=False, h_tile=512):
    """x: (B, S, E) f32. params: output of prepare_ffn_params."""
    B, S, E = x.shape
    assert E == params["E"], "embedding dim mismatch"
    w1_p, b1_p, w2_p, b2_p = params["w1"], params["b1"], params["w2"], params["b2"]
    Ep, Hp = w1_p.shape
    M = B * S

    vmem_cap = _vmem_capacity_bytes()
    vmem_budget = int(0.85 * vmem_cap)          # ≈54 MiB v7x, ≈108 MiB v5e/v6e

    # Token tile: bigger on 128 MiB parts (v5e/v6e), smaller on 64 MiB (v7x).
    if tm is None:
        if vmem_cap >= (96 << 20):
            tm = 512
        else:
            tm = 128 if Hp >= 8192 else 256

    TM = _round_up(M, 8) if M <= tm else tm
    Mp = _round_up(M, TM)
    # Megacore balance (v7x, 2 TCs): make sure there are >= 2 token tiles.
    if Mp // TM < 2 and M > 8:
        TM = _round_up((M + 1) // 2, 8)
        Mp = _round_up(M, TM)
    chunk = _pick_chunk(TM)

    # Path choice: resident bf16 weights must fit comfortably (single-buffered).
    resident_w_bytes = 2 * Ep * Hp * 2
    use_h_tiling = force_h_tiling or (resident_w_bytes > vmem_budget // 2)

    # Stream activations as bf16; no-padding fast path when lane-aligned.
    x2d = x.reshape(M, E).astype(jnp.bfloat16)
    if Mp != M or Ep != E:
        x2d = jnp.zeros((Mp, Ep), jnp.bfloat16).at[:M, :E].set(x2d)

    if not use_h_tiling:
        resident = resident_w_bytes + (Hp + Ep) * 4                  # W1+W2 bf16, biases f32
        streamed = 2 * TM * Ep * 2 + 2 * TM * Ep * 4                 # x (bf16) + out (f32), 2-buffered
        scratch = 2 * chunk * Hp * 4                                 # live f32 intermediate
        vmem_limit = int(min(resident + streamed + scratch + (16 << 20), vmem_budget))

        out2d = pl.pallas_call(
            _make_resident_kernel(TM, chunk),
            out_shape=jax.ShapeDtypeStruct((Mp, Ep), jnp.float32),
            grid_spec=pltpu.PrefetchScalarGridSpec(
                num_scalar_prefetch=0,
                grid=(Mp // TM,),
                in_specs=[
                    pl.BlockSpec((TM, Ep), lambda i: (i, 0)),                    # streamed x
                    pl.BlockSpec((Ep, Hp), lambda i: (0, 0),
                                 pipeline_mode=pl.Buffered(1)),                  # resident W1
                    pl.BlockSpec((1, Hp), lambda i: (0, 0),
                                 pipeline_mode=pl.Buffered(1)),                  # resident b1
                    pl.BlockSpec((Hp, Ep), lambda i: (0, 0),
                                 pipeline_mode=pl.Buffered(1)),                  # resident W2
                    pl.BlockSpec((1, Ep), lambda i: (0, 0),
                                 pipeline_mode=pl.Buffered(1)),                  # resident b2
                ],
                out_specs=pl.BlockSpec((TM, Ep), lambda i: (i, 0)),
            ),
            compiler_params=pltpu.CompilerParams(
                dimension_semantics=("parallel",),
                vmem_limit_bytes=vmem_limit,
            ),
        )(x2d, w1_p, b1_p, w2_p, b2_p)
    else:
        # Hidden-dim tile: largest multiple-of-128 divisor of Hp that is <= h_tile.
        TH = 128
        for cand in range(128, min(h_tile, Hp) + 1, 128):
            if Hp % cand == 0:
                TH = cand

        wtiles = 2 * (2 * Ep * TH * 2) + 2 * TH * 4 + Ep * 4         # W1/W2/b1 tiles (2-buffered) + b2
        streamed = 2 * TM * Ep * 2 + 2 * TM * Ep * 4                 # x + out
        acc_bytes = TM * Ep * 4
        scratch = 2 * chunk * TH * 4
        vmem_limit = int(min(wtiles + streamed + acc_bytes + scratch + (16 << 20),
                             vmem_budget))

        out2d = pl.pallas_call(
            _make_htiled_kernel(TM, chunk),
            out_shape=jax.ShapeDtypeStruct((Mp, Ep), jnp.float32),
            grid_spec=pltpu.PrefetchScalarGridSpec(
                num_scalar_prefetch=0,
                grid=(Mp // TM, Hp // TH),
                in_specs=[
                    pl.BlockSpec((TM, Ep), lambda i, h: (i, 0)),     # x (re-used across h)
                    pl.BlockSpec((Ep, TH), lambda i, h: (0, h)),     # W1 tile
                    pl.BlockSpec((1, TH), lambda i, h: (0, h)),      # b1 tile
                    pl.BlockSpec((TH, Ep), lambda i, h: (h, 0)),     # W2 tile
                    pl.BlockSpec((1, Ep), lambda i, h: (0, 0),
                                 pipeline_mode=pl.Buffered(1)),      # b2 resident
                ],
                out_specs=pl.BlockSpec((TM, Ep), lambda i, h: (i, 0)),
                scratch_shapes=[pltpu.VMEM((TM, Ep), jnp.float32)],  # f32 accumulator
            ),
            compiler_params=pltpu.CompilerParams(
                dimension_semantics=("parallel", "arbitrary"),
                vmem_limit_bytes=vmem_limit,
            ),
        )(x2d, w1_p, b1_p, w2_p, b2_p)

    if Mp != M or Ep != E:
        out2d = out2d[:M, :E]
    return out2d.reshape(B, S, E)


def _reference(x, w1, b1, w2, b2):
    h = x @ w1 + b1
    c = math.sqrt(2.0 / math.pi)
    h = 0.5 * h * (1.0 + jnp.tanh(c * (h + 0.044715 * h ** 3)))
    return h @ w2 + b2


if __name__ == "__main__":
    key = jax.random.PRNGKey(0)

    def init_params(k, E, H):
        kw1, kb1, kw2, kb2 = jax.random.split(k, 4)
        lim1 = 1.0 / math.sqrt(E)
        lim2 = 1.0 / math.sqrt(H)
        w1 = jax.random.uniform(kw1, (E, H), dtype=jnp.float32, minval=-lim1, maxval=lim1)
        b1 = jax.random.uniform(kb1, (H,), dtype=jnp.float32, minval=-lim1, maxval=lim1)
        w2 = jax.random.uniform(kw2, (H, E), dtype=jnp.float32, minval=-lim2, maxval=lim2)
        b2 = jax.random.uniform(kb2, (E,), dtype=jnp.float32, minval=-lim2, maxval=lim2)
        return w1, b1, w2, b2

    k1, k2, kx1, kx2 = jax.random.split(key, 4)

    # Config 1: small emb_dim (needs lane padding) -> resident-weight path.
    B, S, E = 2, 8, 32
    H = 4 * E
    w1, b1, w2, b2 = init_params(k1, E, H)
    x = jax.random.uniform(kx1, (B, S, E), dtype=jnp.float32)
    params = prepare_ffn_params(w1, b1, w2, b2)
    out = feed_forward(x, params)
    jax.block_until_ready(out)
    ref = _reference(x, w1, b1, w2, b2)
    assert out.shape == (B, S, E)
    err = float(jnp.max(jnp.abs(out - ref)))
    assert jnp.allclose(out, ref, atol=2e-2, rtol=2e-2), err

    # Config 2: lane-aligned emb_dim, force the H-tiled accumulator path
    # (2 hidden-dim steps) to exercise the large-weight / v7x code path.
    B2, S2, E2 = 2, 8, 128
    H2 = 4 * E2
    w1b, b1b, w2b, b2b = init_params(k2, E2, H2)
    x2 = jax.random.uniform(kx2, (B2, S2, E2), dtype=jnp.float32)
    params2 = prepare_ffn_params(w1b, b1b, w2b, b2b)
    out2 = feed_forward(x2, params2, force_h_tiling=True, h_tile=256)
    jax.block_until_ready(out2)
    ref2 = _reference(x2, w1b, b1b, w2b, b2b)
    assert out2.shape == (B2, S2, E2)
    err2 = float(jnp.max(jnp.abs(out2 - ref2)))
    assert jnp.allclose(out2, ref2, atol=2e-2, rtol=2e-2), err2

    print("KERNEL_OK")
</pallas_src>

<mosaic_0001>
module attributes {stable_mosaic.version = 11 : i64} {
  func.func @kernel(%arg0: i32, %arg1: memref<8x128xbf16, #tpu.memory_space<vmem>>, %arg2: memref<128x128xbf16, #tpu.memory_space<vmem>>, %arg3: memref<1x128xf32, #tpu.memory_space<vmem>>, %arg4: memref<128x128xbf16, #tpu.memory_space<vmem>>, %arg5: memref<1x128xf32, #tpu.memory_space<vmem>>, %arg6: memref<8x128xf32, #tpu.memory_space<vmem>>) attributes {dimension_semantics = [#tpu.dimension_semantics<parallel>], iteration_bounds = array<i64: 2>, scalar_prefetch = 0 : i64, scratch_operands = 0 : i64, tpu.core_type = #tpu.core_type<tc>, window_params = [{transform_indices = @transform_0, window_bounds = array<i64: 8, 128>}, {pipeline_mode = #tpu.pipeline_mode<synchronous>, transform_indices = @transform_1, window_bounds = array<i64: 128, 128>}, {pipeline_mode = #tpu.pipeline_mode<synchronous>, transform_indices = @transform_2, window_bounds = array<i64: 1, 128>}, {pipeline_mode = #tpu.pipeline_mode<synchronous>, transform_indices = @transform_3, window_bounds = array<i64: 128, 128>}, {pipeline_mode = #tpu.pipeline_mode<synchronous>, transform_indices = @transform_4, window_bounds = array<i64: 1, 128>}, {transform_indices = @transform_5, window_bounds = array<i64: 8, 128>}]} {
    %c0 = arith.constant 0 : index
    %c0_0 = arith.constant 0 : index
    %0 = vector.load %arg2[%c0, %c0_0] : memref<128x128xbf16, #tpu.memory_space<vmem>>, vector<128x128xbf16>
    %c0_1 = arith.constant 0 : index
    %c0_2 = arith.constant 0 : index
    %1 = vector.load %arg4[%c0_1, %c0_2] : memref<128x128xbf16, #tpu.memory_space<vmem>>, vector<128x128xbf16>
    %c0_3 = arith.constant 0 : index
    %c0_4 = arith.constant 0 : index
    %2 = vector.load %arg3[%c0_3, %c0_4] : memref<1x128xf32, #tpu.memory_space<vmem>>, vector<1x128xf32>
    %c0_5 = arith.constant 0 : index
    %c0_6 = arith.constant 0 : index
    %3 = vector.load %arg5[%c0_5, %c0_6] : memref<1x128xf32, #tpu.memory_space<vmem>>, vector<1x128xf32>
    %c0_7 = arith.constant 0 : index
    %c0_8 = arith.constant 0 : index
    %4 = vector.load %arg1[%c0_7, %c0_8] : memref<8x128xbf16, #tpu.memory_space<vmem>>, vector<8x128xbf16>
    %cst = arith.constant dense<0.000000e+00> : vector<8x128xf32>
    %5 = tpu.matmul %4, %0, %cst {dimension_numbers = #tpu.dot_dimension_numbers<[1], [0], [0], [1], [0, 0, 1, 1], [], []>} : vector<8x128xbf16>, vector<128x128xbf16>, vector<8x128xf32> -> vector<8x128xf32>
    %6 = vector.broadcast %2 : vector<1x128xf32> to vector<8x128xf32>
    %7 = arith.addf %5, %6 : vector<8x128xf32>
    %cst_9 = arith.constant 5.000000e-01 : f32
    %8 = vector.broadcast %cst_9 : f32 to vector<8x128xf32>
    %9 = arith.mulf %8, %7 : vector<8x128xf32>
    %10 = arith.mulf %7, %7 : vector<8x128xf32>
    %11 = arith.mulf %10, %7 : vector<8x128xf32>
    %cst_10 = arith.constant 4.471500e-02 : f32
    %12 = vector.broadcast %cst_10 : f32 to vector<8x128xf32>
    %13 = arith.mulf %12, %11 : vector<8x128xf32>
    %14 = arith.addf %7, %13 : vector<8x128xf32>
    %cst_11 = arith.constant 0.797884583 : f32
    %15 = vector.broadcast %cst_11 : f32 to vector<8x128xf32>
    %16 = arith.mulf %15, %14 : vector<8x128xf32>
    %17 = math.tanh %16 : vector<8x128xf32>
    %cst_12 = arith.constant 1.000000e+00 : f32
    %18 = vector.broadcast %cst_12 : f32 to vector<8x128xf32>
    %19 = arith.addf %18, %17 : vector<8x128xf32>
    %20 = arith.mulf %9, %19 : vector<8x128xf32>
    %21 = arith.truncf %20 : vector<8x128xf32> to vector<8x128xbf16>
    %cst_13 = arith.constant dense<0.000000e+00> : vector<8x128xf32>
    %22 = tpu.matmul %21, %1, %cst_13 {dimension_numbers = #tpu.dot_dimension_numbers<[1], [0], [0], [1], [0, 0, 1, 1], [], []>} : vector<8x128xbf16>, vector<128x128xbf16>, vector<8x128xf32> -> vector<8x128xf32>
    %23 = vector.broadcast %3 : vector<1x128xf32> to vector<8x128xf32>
    %24 = arith.addf %22, %23 : vector<8x128xf32>
    %c0_14 = arith.constant 0 : index
    %c0_15 = arith.constant 0 : index
    %25 = vector.load %arg6[%c0_14, %c0_15] : memref<8x128xf32, #tpu.memory_space<vmem>>, vector<8x128xf32>
    tpu.vector_store %arg6[%c0_14, %c0_15], %24 {strides = array<i32>} : memref<8x128xf32, #tpu.memory_space<vmem>>, vector<8x128xf32>,
    return
  }
  func.func @transform_0(%arg0: i32) -> (i32, i32) {
    %c0_i32 = arith.constant 0 : i32
    %c0_i32_0 = arith.constant 0 : i32
    return %arg0, %c0_i32 : i32, i32
  }
  func.func @transform_1(%arg0: i32) -> (i32, i32) {
    %c0_i32 = arith.constant 0 : i32
    %c0_i32_0 = arith.constant 0 : i32
    %c0_i32_1 = arith.constant 0 : i32
    return %c0_i32, %c0_i32_0 : i32, i32
  }
  func.func @transform_2(%arg0: i32) -> (i32, i32) {
    %c0_i32 = arith.constant 0 : i32
    %c0_i32_0 = arith.constant 0 : i32
    %c0_i32_1 = arith.constant 0 : i32
    return %c0_i32, %c0_i32_0 : i32, i32
  }
  func.func @transform_3(%arg0: i32) -> (i32, i32) {
    %c0_i32 = arith.constant 0 : i32
    %c0_i32_0 = arith.constant 0 : i32
    %c0_i32_1 = arith.constant 0 : i32
    return %c0_i32, %c0_i32_0 : i32, i32
  }
  func.func @transform_4(%arg0: i32) -> (i32, i32) {
    %c0_i32 = arith.constant 0 : i32
    %c0_i32_0 = arith.constant 0 : i32
    %c0_i32_1 = arith.constant 0 : i32
    return %c0_i32, %c0_i32_0 : i32, i32
  }
  func.func @transform_5(%arg0: i32) -> (i32, i32) {
    %c0_i32 = arith.constant 0 : i32
    %c0_i32_0 = arith.constant 0 : i32
    return %arg0, %c0_i32 : i32, i32
  }
}

</mosaic_0001>

<bundles_post_ra>
// kernel: tpu_custom_call.1
= control target key start
LH: loop header
LB: loop body
LE: loop exit
PB: predicated region body
PF: predicated region fallthrough
CT: control target
= control target key end

     0   :  { %10 = vsyncpa [#allocation3], 0  ;;  %s1163_s0 = inlined_call_operand.hbm [shape: bf16[16,128], index: 0, kind: input, shape index: {}]   ;;  %s1164_s1 = inlined_call_operand.hbm [shape: bf16[128,128], index: 1, kind: input, shape index: {}]   ;;  %s1165_s2 = inlined_call_operand.vmem [shape: f32[1,128], index: 2, kind: input, shape index: {}]   ;;  %s1166_s3 = inlined_call_operand.hbm [shape: bf16[128,128], index: 3, kind: input, shape index: {}]   ;;  %s1167_s4 = inlined_call_operand.vmem [shape: f32[1,128], index: 4, kind: input, shape index: {}]   ;;  %s1168_s5 = inlined_call_operand.hbm [shape: f32[16,128], index: 5, kind: output, shape index: {}]  }
   0x1   :  { %12 = vsyncpa [#allocation3 + $0x1], 0 }
   0x2   :  { %13 = vsyncpa [#allocation6], 0 }
   0x3   :  { %14 = vsyncpa [#allocation4], 0 }
   0x4   :  { %16 = vsyncpa [#allocation4 + $0x1], 0  ;;  %s976_s18 = smov 0   ;;  %s978_s19 = smov 0  }
   0x5   :  { %s980_s20 = smov 0   ;;  %s982_s21 = smov 0  }
   0x6 LB: > { %s997_s22 = sadd.s32 4294967295, %s936_s21   ;;  %s607_s23 = sadd.s32 4294967294, %s936_s21   ;;  %s936_s21 = sphi %s982_s21, %s1190_s21   ;;  %s932_s20 = sphi %s980_s20, %s1189_s20   ;;  %s928_s19 = sphi %s978_s19, %s1188_s19   ;;  %s924_s18 = sphi %s976_s18, %s1187_s18  }
   0x7   : > { %p42_p0 = scmp.ne.s32.totalorder %s928_s19, %s924_s18  ;;  %p1169_p1 = scmp.eq.s32.totalorder %s997_s22, 0 }
   0x8   : > { %p156_p3 = scmp.eq.s32.totalorder %s607_s23, 1  ;;  %p608_p5 = scmp.ge.s32.totalorder %s936_s21, 1 }
   0x9   : > { %p1006_p4 = por %p1169_p1, %p42_p0  ;;  %p163_p7 = scmp.lt.s32.totalorder %s936_s21, 3 }
   0xa   : > { %p1011_p6 = por %p156_p3, %p42_p0  ;;  %s938_s27 = smov [#allocation5]  }
   0xb   : > { %s1173_s24 = scalar_select %p1006_p4, 1, 0 }
   0xc   : > { %s1174_s25 = scalar_select %p1011_p6, 1, 0 }
   0xd   : > { %p1016_p8 = pnand %p608_p5, %p163_p7  ;;  %s175_s28 = sshll.u32 %s938_s27, 4  ;;  %s176_s28 = int_to_ptr.vmem [resolvable:$true] %s175_s28 }
   0xe   : > { %s939_s30 = smov [#allocation7]   ;;  %s799_s7 = scalar_lea.vmem %s176_s28, 1024 }
   0xf   : > { %s1175_s26 = scalar_select %p1016_p8, 1, 0 }
  0x10   : > { %p711_p9 = pneg %p1016_p8  ;;  %s191_s6 = sshll.u32 %s939_s30, 4  ;;  %s192_s6 = int_to_ptr.vmem [resolvable:$true] %s191_s6 }
  0x11   : > { %p800_p13 = scmp.ne.s32.totalorder %s176_s28, %s799_s7  ;;  %p807_p5 = scmp.lt.s32.totalorder %s176_s28, %s176_s28 }
  0x12   : > { %p1025_p11 = pnand %p711_p9, %p1169_p1  ;;  %p808_p7 = scmp.lt.s32.totalorder %s799_s7, %s799_s7 }
  0x14   : > { %p790_p12 = pneg %p1025_p11  ;;  %p809_p10 = por %p808_p7, %p807_p5 }
  0x16   : > { %p802_p0 = pnand %p800_p13, %p790_p12 }
  0x18   : > { %p803_p3 = pneg %p802_p0 }
  0x1a   : > { %p810_p9 = pnand %p809_p10, %p803_p3 }
  0x1c   : > { %813 = shalt.err (!%p810_p9)
}
  0x1d   : > { %s940_s8 = smov 64   ;;  %s941_s9 = smov 4  }
  0x1e   : > { %714 = dma.hbm_to_vmem [thread:$0]  (!%p1025_p11), %s1164_s1, 1024, %s176_s28, [#allocation6], %s940_s8, %s940_s8, %s941_s9  }
  0x1f   : > { %s825_s12 = scalar_lea.vmem %s192_s6, 1024  ;;  %p833_p2 = scmp.lt.s32.totalorder %s192_s6, %s192_s6 }
  0x20   : > { %p826_p1 = scmp.ne.s32.totalorder %s192_s6, %s825_s12  ;;  %p834_p6 = scmp.lt.s32.totalorder %s825_s12, %s825_s12 }
  0x22   : > { %p828_p13 = pnand %p826_p1, %p790_p12  ;;  %p835_p5 = por %p834_p6, %p833_p2 }
  0x24   : > { %p829_p0 = pneg %p828_p13 }
  0x26   : > { %p836_p10 = pnand %p835_p5, %p829_p0 }
  0x28   : > { %839 = shalt.err (!%p836_p10)
}
  0x29   : > { %717 = dma.hbm_to_vmem [thread:$0]  (!%p1025_p11), %s1166_s3, 1024, %s192_s6, [#allocation6], %s940_s8, %s940_s8, %s941_s9  }
  0x2a   : > { %s1048_s15 = sadd.s32 1, %s936_s21   ;;  %s29_s16 = sadd.s32 1, %s932_s20 }
  0x2b   : > { %s26_s17 = ssub.s32 %s936_s21, %s1048_s15  ;;  %p36_p1 = scmp.ne.s32.totalorder %s932_s20, %s928_s19 }
  0x2c   : > { %p27_p2 = scmp.eq.s32.totalorder %s26_s17, 0  ;;  %p37_p6 = scmp.eq.s32.totalorder %s936_s21, 0 }
  0x2d   : > { %p1177_p12 = scmp.eq.s32.totalorder %s997_s22, 1  ;;  %p728_p7 = scmp.lt.s32.totalorder %s936_s21, 2 }
  0x2e   : > { %s1064_s27 = scalar_select %p27_p2, %s932_s20, %s29_s16  }
  0x2f   : > { %p1058_p3 = por %p1177_p12, %p36_p1  ;;  %p38_p9 = por %p37_p6, %p36_p1 }
  0x30   : > { %s208_s28 = sand.u32 1, %s932_s20   ;;  %s613_s30 = sshll.u32 %s936_s21, 6 }
  0x31   : > { %s1178_s23 = scalar_select %p1058_p3, 1, 0 }
  0x32   : > { %s612_s29 = sshll.u32 %s208_s28, 2  ;;  %s1071_s8 = scalar_lea.hbm %s1163_s0, %s613_s30 }
  0x33   : > { %s212_s9 = scalar_lea.vmem [#allocation2], %s612_s29  ;;  %p1073_p11 = pnand %p728_p7, %p38_p9 }
  0x34   : > { %s219_s10 = sshll.u32 %s212_s9, 4  ;;  %s209_s12 = scalar_lea.sflag [#allocation3], %s208_s28  ;;  %s220_s10 = int_to_ptr.vmem [resolvable:$true] %s219_s10 }
  0x35   : > { %s840_s13 = scalar_lea.hbm %s1071_s8, 64  ;;  %p842_p0 = pneg %p1073_p11 }
  0x36   : > { %p841_p13 = scmp.ne.s32.totalorder %s1071_s8, %s840_s13  ;;  %s845_s17 = scalar_lea.hbm %s1163_s0, 128 }
  0x37   : > { %p846_p1 = scmp.lt.s32.totalorder %s1071_s8, %s1163_s0  ;;  %p847_p2 = scmp.lt.s32.totalorder %s845_s17, %s840_s13 }
  0x38   : > { %p843_p5 = pnand %p842_p0, %p841_p13 }
  0x39   : > { %p848_p6 = por %p847_p2, %p846_p1 }
  0x3a   : > { %p844_p10 = pneg %p843_p5 }
  0x3c   : > { %p849_p12 = pnand %p848_p6, %p844_p10 }
  0x3e   : > { %852 = shalt.err (!%p849_p12)
}
  0x3f   : > { %s853_s6 = scalar_lea.vmem %s220_s10, 64  ;;  %s942_s28 = smov [#allocation2]  }
  0x40   : > { %p854_p7 = scmp.ne.s32.totalorder %s220_s10, %s853_s6  ;;  %s858_s7 = sshll.u32 %s942_s28, 4  ;;  %s859_s7 = int_to_ptr.vmem [resolvable:$false] %s858_s7 }
  0x41   : > { %s860_s9 = scalar_lea.vmem %s859_s7, 128  ;;  %p861_p13 = scmp.lt.s32.totalorder %s220_s10, %s859_s7 }
  0x42   : > { %p856_p9 = pnand %p854_p7, %p842_p0  ;;  %p862_p5 = scmp.lt.s32.totalorder %s860_s9, %s853_s6 }
  0x44   : > { %p857_p3 = pneg %p856_p9  ;;  %p863_p4 = por %p862_p5, %p861_p13 }
  0x46   : > { %p864_p8 = pnand %p863_p4, %p857_p3 }
  0x48   : > { %867 = shalt.err (!%p864_p8)
}
  0x49   : > { %721 = dma.hbm_to_vmem [thread:$0]  (!%p1073_p11), %s1071_s8, 64, %s220_s10, %s209_s12  }
  0x4a   : > { %p1180_p10 = scmp.ne.s32.totalorder %s1175_s26, 0 }
  0x4b   : > { %s1094_s13 = sand.u32 (!%p1180_p10), 1, %s928_s19   ;;  %p1181_p0 = scmp.ne.s32.totalorder (!%p1180_p10), %s1173_s24, 0 }
  0x4c   : > { %228 = sbr.rel (%p1180_p10) target bundleno = 553 (0x229), region = 40  ;;  %s615_s14 = sshll.u32 (!%p1180_p10), %s1094_s13, 2 }
  0x4d   : > { %s231_s16 = scalar_lea.sflag (!%p1180_p10), [#allocation3], %s1094_s13  ;;  %s1098_s17 = scalar_lea.vmem (!%p1180_p10), [#allocation2], %s615_s14 }
  0x51   : > { %911 = dma.done.wait (%p1181_p0), %s231_s16, 64  }
  0x52   : > { %913 = vsyncadd (%p1181_p0), %s231_s16, 4294967232  ;;  %p1182_p4 = scmp.eq.s32.totalorder %s997_s22, 0 }
  0x54   : > { %915 = dma.done.wait (%p1182_p4), [#allocation6], 2048   ;;  %p1183_p8 = pmov %p1182_p4 }
  0x55   : > { %v943_v0 = vmov 0.0   ;;  %vm944_vm0 = vmmov 0   ;;  %v770_v1 = vld [vmem:[#allocation5 + $0x38] sm:$0xff]   ;;  %v771_v2 = vld [vmem:[#allocation5 + $0x30] sm:$0xff]   ;;  %v772_v3 = vld [vmem:[#allocation5 + $0x28] sm:$0xff]   ;;  %s618_s8 = sshll.u32 %s1094_s13, 3 }
  0x56   : > { %917 = vsyncadd (%p1183_p8), [#allocation6], 4294965248  ;;  %659 = vmatprep.subr.bf16.mxu0 %v943_v0  ;;  %675 = vmatprep.mubr.msk.bf16.mxu0 %vm944_vm0, %v943_v0  ;;  %v773_v4 = vld [vmem:[#allocation5 + $0x20] sm:$0xff]   ;;  %v774_v5 = vld [vmem:[#allocation5 + $0x18] sm:$0xff]   ;;  %s638_s12 = sshll.u32 %s997_s22, 7  ;;  %s268_s30 = scalar_lea.vmem [#allocation8], %s618_s8 }
  0x57   : > { %679 = vmatprep.subr.bf16.mxu1 %v943_v0  ;;  %695 = vmatprep.mubr.msk.bf16.mxu1 %vm944_vm0, %v943_v0  ;;  %v775_v6 = vld [vmem:[#allocation5 + $0x10] sm:$0xff]   ;;  %v776_v7 = vld [vmem:[#allocation5 + $0x8] sm:$0xff]   ;;  %v777_v8 = vld [vmem:[#allocation5] sm:$0xff]   ;;  %s518_s29 = sshll.u32 %s268_s30, 4  ;;  %s1120_s7 = scalar_lea.hbm %s1168_s5, %s638_s12  ;;  %s1122_s29 = int_to_ptr.vmem [resolvable:$true] %s518_s29 }
  0x58   : > { %660 = vmatpush3.bf16.msra.mxu0 %v770_v1  ;;  %v304_v9 = vld [vmem:[%s1098_s17] sm:$0xf]  ;;  %v779_v11 = vld [vmem:[#allocation7 + $0x30] sm:$0xff]   ;;  %v780_v12 = vld [vmem:[#allocation7 + $0x28] sm:$0xff]   ;;  %s505_s9 = scalar_lea.sflag [#allocation4], %s1094_s13  ;;  %s868_s14 = scalar_lea.vmem %s1122_s29, 128 }
  0x59   : > { %661 = vmatprep.subr.bf16.mxu0 %v943_v0  ;;  %v778_v10 = vld [vmem:[#allocation7 + $0x38] sm:$0xff]   ;;  %v781_v13 = vld [vmem:[#allocation7 + $0x20] sm:$0xff]   ;;  %v783_v15 = vld [vmem:[#allocation7 + $0x10] sm:$0xff]   ;;  %p869_p3 = scmp.ne.s32.totalorder %s1122_s29, %s868_s14  ;;  %p1184_p11 = scmp.ne.s32.totalorder %s1178_s23, 0 }
  0x5a   : > { %680 = vmatpush3.bf16.msra.mxu1 %v778_v10  ;;  %v782_v14 = vld [vmem:[#allocation7 + $0x18] sm:$0xff]   ;;  %v784_v16 = vld [vmem:[#allocation7 + $0x8] sm:$0xff]   ;;  %v785_v17 = vld [vmem:[#allocation7] sm:$0xff]   ;;  %s945_s22 = smov [#allocation8]  }
  0x5b   : > { %681 = vmatprep.subr.bf16.mxu1 %v943_v0  ;;  %v619_v18 = vld [vmem:[%s1165_s2] ss:$0 sm:$0xff]  ;;  %p870_p1 = pnand %p869_p3, %p1184_p11  ;;  %s872_s16 = sshll.u32 %s945_s22, 4  ;;  %s873_s16 = int_to_ptr.vmem [resolvable:$false] %s872_s16 }
  0x5c   : > { %662 = vmatpush3.bf16.msra.mxu0 %v771_v2  ;;  %v628_v34 = vld [vmem:[%s1167_s4] ss:$0 sm:$0xff]  ;;  %s874_s17 = scalar_lea.vmem %s873_s16, 256  ;;  %p875_p6 = scmp.lt.s32.totalorder %s1122_s29, %s873_s16 }
  0x5d   : > { %663 = vmatprep.subr.bf16.mxu0 %v943_v0  ;;  %p871_p2 = pneg %p870_p1  ;;  %p876_p12 = scmp.lt.s32.totalorder %s874_s17, %s868_s14 }
  0x5e   : > { %682 = vmatpush3.bf16.msra.mxu1 %v779_v11 }
  0x5f   : > { %683 = vmatprep.subr.bf16.mxu1 %v943_v0  ;;  %p877_p7 = por %p876_p12, %p875_p6 }
  0x60   : > { %664 = vmatpush3.bf16.msra.mxu0 %v772_v3 }
  0x61   : > { %665 = vmatprep.subr.bf16.mxu0 %v943_v0  ;;  %p878_p9 = pnand %p877_p7, %p871_p2 }
  0x62   : > { %684 = vmatpush3.bf16.msra.mxu1 %v780_v12 }
  0x63   : > { %685 = vmatprep.subr.bf16.mxu1 %v943_v0 }
  0x64   : > { %666 = vmatpush3.bf16.msra.mxu0 %v773_v4 }
  0x65   : > { %667 = vmatprep.subr.bf16.mxu0 %v943_v0 }
  0x66   : > { %686 = vmatpush3.bf16.msra.mxu1 %v781_v13 }
  0x67   : > { %687 = vmatprep.subr.bf16.mxu1 %v943_v0 }
  0x68   : > { %668 = vmatpush3.bf16.msra.mxu0 %v774_v5 }
  0x69   : > { %669 = vmatprep.subr.bf16.mxu0 %v943_v0 }
  0x6a   : > { %688 = vmatpush3.bf16.msra.mxu1 %v782_v14 }
  0x6b   : > { %689 = vmatprep.subr.bf16.mxu1 %v943_v0 }
  0x6c   : > { %670 = vmatpush3.bf16.msra.mxu0 %v775_v6 }
  0x6d   : > { %671 = vmatprep.subr.bf16.mxu0 %v943_v0 }
  0x6e   : > { %690 = vmatpush3.bf16.msra.mxu1 %v783_v15 }
  0x6f   : > { %691 = vmatprep.subr.bf16.mxu1 %v943_v0 }
  0x70   : > { %672 = vmatpush3.bf16.msra.mxu0 %v776_v7 }
  0x71   : > { %673 = vmatprep.subr.bf16.mxu0 %v943_v0 }
  0x72   : > { %692 = vmatpush3.bf16.msra.mxu1 %v784_v16 }
  0x73   : > { %693 = vmatprep.subr.bf16.mxu1 %v943_v0 }
  0x74   : > { %674 = vmatpush3.bf16.msra.mxu0 %v777_v8 }
  0x76   : > { %694 = vmatpush3.bf16.msra.mxu1 %v785_v17 }
  0x77   : > { %676 = vmatmul.mubr.bf16.vlgmr.msra.gmra.mxu0 %v304_v9 }
 0x137   : > { %v393_v19 = vpop.f32.mrf.mxu0 }
 0x138   : > { %v394_v20 = vadd.f32 %v619_v18, %v393_v19 }
 0x139   : > { %v677_v21 = vpop.f32.mrf.mxu0 }
 0x13a   : > { %v400_v22 = vmul.f32 %v394_v20, %v394_v20  ;;  %v399_v30 = vmul.f32 0.5, %v394_v20 }
 0x13b   : > { %v396_v23 = vpop.f32.mrf.mxu0 }
 0x13c   : > { %v401_v24 = vmul.f32 %v400_v22, %v394_v20 }
 0x13d   : > { %v678_v25 = vpop.f32.mrf.mxu0 }
 0x13e   : > { %v402_v26 = vmul.f32 0.044715, %v401_v24 }
 0x140   : > { %v403_v27 = vadd.f32 %v402_v26, %v394_v20 }
 0x142   : > { %v404_v28 = vmul.f32 0.7978846, %v403_v27 }
 0x144   : > { %786 = vtanh.f32 %v404_v28 }
 0x151   : > { %v787_v29 = vpop.eup %786 }
 0x152   : > { %v406_v31 = vadd.f32 1.0, %v787_v29 }
 0x154   : > { %v407_v32 = vmul.f32 %v406_v31, %v399_v30 }
 0x156   : > { %v408_v33 = vpack.c.bf16 %v407_v32, %v407_v32 }
 0x158   : > { %696 = vmatmul.mubr.bf16.vlgmr.msra.gmra.mxu1 %v408_v33 }
 0x218   : > { %v497_v35 = vpop.f32.mrf.mxu1 }
 0x219   : > { %v498_v36 = vadd.f32 %v628_v34, %v497_v35 }
 0x21a   : > { %v697_v37 = vpop.f32.mrf.mxu1 }
 0x21b   : > { %503 = vst [vmem:[%s268_s30] sm:$0xff] %v498_v36 }
 0x21c   : > { %v500_v38 = vpop.f32.mrf.mxu1 }
 0x21d   : > { %881 = shalt.err (!%p878_p9)
}
 0x21e   : > { %s882_s24 = scalar_lea.hbm %s1120_s7, 128  ;;  %s886_s8 = scalar_lea.hbm %s1168_s5, 256 }
 0x21f   : > { %p883_p13 = scmp.ne.s32.totalorder %s1120_s7, %s882_s24  ;;  %p887_p0 = scmp.lt.s32.totalorder %s1120_s7, %s1168_s5 }
 0x220   : > { %p888_p4 = scmp.lt.s32.totalorder %s886_s8, %s882_s24 }
 0x221   : > { %p884_p5 = pnand %p883_p13, %p1184_p11 }
 0x222   : > { %p889_p8 = por %p888_p4, %p887_p0 }
 0x223   : > { %p885_p10 = pneg %p884_p5 }
 0x225   : > { %p890_p3 = pnand %p889_p8, %p885_p10 }
 0x227   : > { %893 = shalt.err (!%p890_p3)
}
 0x228   : > { %709 = dma.vmem_to_hbm [thread:$0]  (%p1184_p11), %s1122_s29, 128, %s1120_s7, %s505_s9   ;;  %v698_v39 = vpop.f32.mrf.mxu1 }
 0x229 PF: > { %s530_s12 = sand.u32 1, %s924_s18   ;;  %p1185_p1 = scmp.ne.s32.totalorder %s1174_s25, 0 }
 0x22a   : > { %p1186_p2 = scmp.ge.s32.totalorder %s936_s21, 2  ;;  %s531_s30 = scalar_lea.sflag [#allocation4], %s530_s12 }
 0x22c   : > { %p723_p6 = pnand %p1186_p2, %p1185_p1 }
 0x22e   : > { %p724_p12 = pneg %p723_p6 }
 0x230   : > { %919 = dma.done.wait (%p724_p12), %s531_s30, 128  }
 0x231   : > { %921 = vsyncadd (%p724_p12), %s531_s30, 4294967168  ;;  %p19_p7 = scmp.ge.s32.totalorder %s1048_s15, 4   ;;  %s1187_s18 = smov %s928_s19 }
 0x232   : > { %s1188_s19 = smov %s932_s20  ;;  %s1189_s20 = smov %s1064_s27 }
 0x233   : > { %s1190_s21 = smov %s1048_s15  ;;  %21 = sbr.rel (!%p19_p7) target bundleno = 6 (0x6), region = 93 }
 0x238   :  { %536 = vsyncpa [#allocation3], 1 }
 0x239   :  { %538 = vsyncpa [#allocation3 + $0x1], 1 }
 0x23a   :  { %539 = vsyncpa [#allocation6], 1 }
 0x23b   :  { %540 = vsyncpa [#allocation4], 1 }
 0x23c   :  { %542 = vsyncpa [#allocation4 + $0x1], 1 }

</bundles_post_ra>
